<compile_context>
chip_gen: v5e
topology: v5e:2x2
jax: 0.10.0
libtpu: 0.0.40
codegen_flags: <defaults>
</compile_context>

<pallas_src>
import jax
import jax.numpy as jnp
from jax.experimental import pallas as pl
from jax.experimental.pallas import tpu as pltpu

NEG_SLOPE = 0.01          # PyTorch nn.LeakyReLU default
LANE = 128
ROW_ALIGN = 16            # multiple of 16 rows: dense sublanes for both f32 and bf16 tiles


def _round_up(x, m):
    return ((x + m - 1) // m) * m


def _choose_tm(n, row_align=ROW_ALIGN, tm_max=512):
    """Batch-tile selection.

    Preference order: (1) at least 2 grid steps so dimension_semantics=("parallel",)
    can shard across v7x's 2 TensorCores, (2) minimal row-padding waste,
    (3) larger tiles (amortize the ~0.35us per-grid-step overhead).
    v5e / v6e (single TC) are unharmed by the 2-step preference.
    """
    n_al = _round_up(max(n, 1), row_align)
    if n_al <= 2 * row_align:
        return n_al                                            # too small to split usefully
    cands = {t for t in (512, 256, 128) if t <= tm_max}
    cands.add(min(n_al, tm_max))                               # single-tile option (small n)
    cands.add(min(_round_up((n_al + 1) // 2, row_align), tm_max))   # ~n/2 -> 2 grid steps
    best_key, best_tm = None, None
    for tm in cands:
        tm = _round_up(min(tm, tm_max), row_align)
        n_pad = _round_up(n, tm)
        key = (0 if n_pad // tm >= 2 else 1, n_pad - n, -tm)
        if best_key is None or key < best_key:
            best_key, best_tm = key, tm
    return best_tm


# ---------------------------------------------------------------------------
# Fused kernel factory
# ---------------------------------------------------------------------------
def _make_fused_kernel(layer_meta, compute_dtype):
    """layer_meta: tuple of (d_in, d_out, has_proj) per hidden layer (static).

    Ref order: x_ref, W_0, [Wres_0,] ..., W_{L-1}, [Wres_{L-1},] W_out, bias_stack, o_ref.
    """
    n_layers = len(layer_meta)

    def kernel(*refs):
        x_ref = refs[0]
        o_ref = refs[-1]
        b_ref = refs[-2]
        w_refs = refs[1:-2]

        b_all = b_ref[...]                  # (n_layers+1, max_width) f32 (tiny)
        fea = x_ref[...]                    # (tm, d_in); stays f32 through the epilogues
        wi = 0
        for li, (_, d_out, has_proj) in enumerate(layer_meta):   # statically unrolled
            # Single cast per layer (only if compute_dtype differs from f32).
            x_c = fea if fea.dtype == compute_dtype else fea.astype(compute_dtype)
            w = w_refs[wi][...]
            wi += 1
            y = jnp.dot(x_c, w, preferred_element_type=jnp.float32)
            y = y + b_all[li:li + 1, :d_out]
            if has_proj:
                w_res = w_refs[wi][...]
                wi += 1
                res = jnp.dot(x_c, w_res, preferred_element_type=jnp.float32)
            else:
                res = fea                   # identity residual (d_in == d_out)
            # LeakyReLU(y) == max(y, slope*y) for slope in (0, 1): one VALU op.
            fea = jnp.maximum(y, NEG_SLOPE * y) + res

        w_out = w_refs[wi][...]
        x_c = fea if fea.dtype == compute_dtype else fea.astype(compute_dtype)
        y = jnp.dot(x_c, w_out, preferred_element_type=jnp.float32)
        y = y + b_all[n_layers:n_layers + 1, :w_out.shape[1]]
        o_ref[...] = y.astype(o_ref.dtype)

    return kernel


# ---------------------------------------------------------------------------
# Parameter init (deterministic, mimics PyTorch default Linear init) -- f32
# ---------------------------------------------------------------------------
def init_params(key, input_dim, output_dim, hidden_layer_dims):
    dims = [input_dim] + list(hidden_layer_dims)
    params = {"fcs": [], "res_fcs": []}
    for i in range(len(dims) - 1):
        key, kw, kb, kr = jax.random.split(key, 4)
        bound = 1.0 / jnp.sqrt(dims[i])
        w = jax.random.uniform(kw, (dims[i], dims[i + 1]), jnp.float32, -bound, bound)
        b = jax.random.uniform(kb, (1, dims[i + 1]), jnp.float32, -bound, bound)
        params["fcs"].append((w, b))
        if dims[i] != dims[i + 1]:
            wr = jax.random.uniform(kr, (dims[i], dims[i + 1]), jnp.float32, -bound, bound)
            params["res_fcs"].append(wr)
        else:
            params["res_fcs"].append(None)  # nn.Identity
    key, kw, kb = jax.random.split(key, 3)
    bound = 1.0 / jnp.sqrt(dims[-1])
    w_out = jax.random.uniform(kw, (dims[-1], output_dim), jnp.float32, -bound, bound)
    b_out = jax.random.uniform(kb, (1, output_dim), jnp.float32, -bound, bound)
    params["fc_out"] = (w_out, b_out)
    return params


# ---------------------------------------------------------------------------
# Pack params for the fused kernel (done once, outside the kernel)
# ---------------------------------------------------------------------------
def pack_params(params, compute_dtype=jnp.float32):
    weights = []
    layer_meta = []
    hidden_widths = []
    for (w, b), wr in zip(params["fcs"], params["res_fcs"]):
        din, dout = w.shape
        weights.append(w.astype(compute_dtype))
        has_proj = wr is not None
        if has_proj:
            weights.append(wr.astype(compute_dtype))
        layer_meta.append((din, dout, has_proj))
        hidden_widths.append(dout)

    w_out, b_out = params["fc_out"]
    d_last, d_head = w_out.shape
    d_head_pad = _round_up(d_head, LANE)   # lane-dense head output store; sliced in wrapper
    w_out_p = jnp.zeros((d_last, d_head_pad), jnp.float32).at[:, :d_head].set(w_out)
    weights.append(w_out_p.astype(compute_dtype))

    # All biases (f32, added to the f32 accumulator) stacked into one input.
    n_layers = len(layer_meta)
    max_w = max(hidden_widths + [d_head_pad])
    b_stack = jnp.zeros((n_layers + 1, max_w), jnp.float32)
    for i, (w, b) in enumerate(params["fcs"]):
        b_stack = b_stack.at[i, :b.shape[1]].set(b[0])
    b_stack = b_stack.at[n_layers, :d_head].set(b_out[0])

    meta = dict(
        input_dim=layer_meta[0][0] if layer_meta else d_last,
        output_dim=d_head,
        output_dim_pad=d_head_pad,
        layer_meta=tuple(layer_meta),
        compute_dtype=compute_dtype,
    )
    return {"weights": weights, "bias_stack": b_stack, "meta": meta}


# ---------------------------------------------------------------------------
# Forward pass: one fused pallas_call, batch-tiled grid
# ---------------------------------------------------------------------------
def residual_network_forward(packed, fea, *, tm_max=512, out_dtype=jnp.float32):
    meta = packed["meta"]
    weights = packed["weights"]
    b_stack = packed["bias_stack"]
    compute_dtype = meta["compute_dtype"]

    n, d_in = fea.shape
    assert d_in == meta["input_dim"]
    d_out = meta["output_dim"]
    d_out_pad = meta["output_dim_pad"]

    tm = _choose_tm(n, tm_max=tm_max)
    n_pad = _round_up(n, tm)
    # No feature-dim padding and no dtype cast in the wrapper: x streams straight
    # from HBM.  Only pad rows when the batch doesn't divide the tile.
    x = fea if n_pad == n else jnp.pad(fea, ((0, n_pad - n), (0, 0)))

    # ---- explicit VMEM budget (defaults are only 16/32 MiB scoped) ----------
    resident = int(sum(int(w.size) * w.dtype.itemsize for w in weights)
                   + int(b_stack.size) * b_stack.dtype.itemsize)
    if resident > (48 << 20):
        # TODO(synk): stream weights layer-by-layer (pltpu.emit_pipeline inside the
        # body) when the resident set exceeds v7x's 64 MiB/TC VMEM budget.
        raise ValueError(
            f"packed weights ({resident >> 20} MiB) exceed the all-VMEM-resident "
            "budget; weight-streaming fallback not implemented")
    max_w = max([m[1] for m in meta["layer_meta"]] + [d_in, d_out_pad])
    io_bytes = (2 * tm * d_in * x.dtype.itemsize
                + 2 * tm * d_out_pad * jnp.dtype(out_dtype).itemsize)
    act_scratch = 4 * tm * max_w * 4       # live f32 activations / intermediates
    vmem_limit = int(1.5 * (resident + io_bytes + act_scratch))
    vmem_limit = min(max(vmem_limit, 16 << 20), 112 << 20)

    kernel = _make_fused_kernel(meta["layer_meta"], compute_dtype)

    in_specs = [pl.BlockSpec((tm, d_in), lambda i: (i, 0))]
    for w in weights:
        # Grid-invariant -> single-buffered: no duplicate weight copy in VMEM.
        in_specs.append(pl.BlockSpec(w.shape, lambda i: (0, 0),
                                     pipeline_mode=pl.Buffered(1)))
    in_specs.append(pl.BlockSpec(b_stack.shape, lambda i: (0, 0),
                                 pipeline_mode=pl.Buffered(1)))

    out = pl.pallas_call(
        kernel,
        out_shape=jax.ShapeDtypeStruct((n_pad, d_out_pad), out_dtype),
        grid=(n_pad // tm,),
        in_specs=in_specs,
        out_specs=pl.BlockSpec((tm, d_out_pad), lambda i: (i, 0)),
        compiler_params=pltpu.CompilerParams(
            dimension_semantics=("parallel",),
            vmem_limit_bytes=vmem_limit),
    )(x, *weights, b_stack)

    return out[:n, :d_out]


# ---------------------------------------------------------------------------
# Pure-JAX reference (f32, PyTorch semantics) for correctness checks
# ---------------------------------------------------------------------------
def _reference_forward(params, fea):
    for (w, b), wres in zip(params["fcs"], params["res_fcs"]):
        y = fea @ w + b
        res = fea if wres is None else fea @ wres
        fea = jnp.where(y >= 0, y, NEG_SLOPE * y) + res
    w_out, b_out = params["fc_out"]
    return fea @ w_out + b_out


if __name__ == "__main__":
    key = jax.random.PRNGKey(0)
    k_param, k_x = jax.random.split(key)

    # Small shapes consistent with the module.
    input_dim, output_dim = 32, 16
    hidden_layer_dims = [32, 64]   # layer 0 -> identity residual, layer 1 -> projection
    batch = 40                     # non-divisible batch: exercises row-pad + 2-step grid

    params = init_params(k_param, input_dim, output_dim, hidden_layer_dims)
    x = jax.random.normal(k_x, (batch, input_dim), jnp.float32)
    ref = _reference_forward(params, x)

    # f32 compute path: must match the reference tightly.
    packed_f32 = pack_params(params, compute_dtype=jnp.float32)
    out = jax.block_until_ready(residual_network_forward(packed_f32, x))
    assert out.shape == (batch, output_dim)
    assert jnp.allclose(out, ref, atol=1e-4, rtol=1e-4), "f32 mismatch vs reference"

    # bf16 weights / in-kernel bf16 MXU inputs, f32 accumulate + f32 epilogue.
    packed_bf16 = pack_params(params, compute_dtype=jnp.bfloat16)
    out_bf16 = jax.block_until_ready(residual_network_forward(packed_bf16, x))
    assert out_bf16.shape == (batch, output_dim)
    assert jnp.allclose(out_bf16, ref, atol=1e-1, rtol=1e-1), "bf16 mismatch vs reference"

    print("KERNEL_OK")
</pallas_src>

<mosaic_0001>
module attributes {stable_mosaic.version = 11 : i64} {
  func.func @kernel(%arg0: i32, %arg1: memref<32x32xf32, #tpu.memory_space<vmem>>, %arg2: memref<32x32xf32, #tpu.memory_space<vmem>>, %arg3: memref<32x64xf32, #tpu.memory_space<vmem>>, %arg4: memref<32x64xf32, #tpu.memory_space<vmem>>, %arg5: memref<64x128xf32, #tpu.memory_space<vmem>>, %arg6: memref<3x128xf32, #tpu.memory_space<vmem>>, %arg7: memref<32x128xf32, #tpu.memory_space<vmem>>) attributes {dimension_semantics = [#tpu.dimension_semantics<parallel>], iteration_bounds = array<i64: 2>, scalar_prefetch = 0 : i64, scratch_operands = 0 : i64, tpu.core_type = #tpu.core_type<tc>, window_params = [{transform_indices = @transform_0, window_bounds = array<i64: 32, 32>}, {pipeline_mode = #tpu.pipeline_mode<synchronous>, transform_indices = @transform_1, window_bounds = array<i64: 32, 32>}, {pipeline_mode = #tpu.pipeline_mode<synchronous>, transform_indices = @transform_2, window_bounds = array<i64: 32, 64>}, {pipeline_mode = #tpu.pipeline_mode<synchronous>, transform_indices = @transform_3, window_bounds = array<i64: 32, 64>}, {pipeline_mode = #tpu.pipeline_mode<synchronous>, transform_indices = @transform_4, window_bounds = array<i64: 64, 128>}, {pipeline_mode = #tpu.pipeline_mode<synchronous>, transform_indices = @transform_5, window_bounds = array<i64: 3, 128>}, {transform_indices = @transform_6, window_bounds = array<i64: 32, 128>}]} {
    %c0 = arith.constant 0 : index
    %c0_0 = arith.constant 0 : index
    %0 = vector.load %arg6[%c0, %c0_0] : memref<3x128xf32, #tpu.memory_space<vmem>>, vector<3x128xf32>
    %c0_1 = arith.constant 0 : index
    %c0_2 = arith.constant 0 : index
    %1 = vector.load %arg1[%c0_1, %c0_2] : memref<32x32xf32, #tpu.memory_space<vmem>>, vector<32x32xf32>
    %c0_3 = arith.constant 0 : index
    %c0_4 = arith.constant 0 : index
    %2 = vector.load %arg2[%c0_3, %c0_4] : memref<32x32xf32, #tpu.memory_space<vmem>>, vector<32x32xf32>
    %cst = arith.constant dense<0.000000e+00> : vector<32x32xf32>
    %3 = tpu.matmul %1, %2, %cst {dimension_numbers = #tpu.dot_dimension_numbers<[1], [0], [0], [1], [0, 0, 1, 1], [], []>} : vector<32x32xf32>, vector<32x32xf32>, vector<32x32xf32> -> vector<32x32xf32>
    %4 = vector.extract_strided_slice %0 {offsets = [0, 0], sizes = [1, 32], strides = [1, 1]} : vector<3x128xf32> to vector<1x32xf32>
    %5 = vector.broadcast %4 : vector<1x32xf32> to vector<32x32xf32>
    %6 = arith.addf %3, %5 : vector<32x32xf32>
    %cst_5 = arith.constant 0.00999999977 : f32
    %7 = vector.broadcast %cst_5 : f32 to vector<32x32xf32>
    %8 = arith.mulf %7, %6 : vector<32x32xf32>
    %9 = arith.maximumf %6, %8 : vector<32x32xf32>
    %10 = arith.addf %9, %1 : vector<32x32xf32>
    %c0_6 = arith.constant 0 : index
    %c0_7 = arith.constant 0 : index
    %11 = vector.load %arg3[%c0_6, %c0_7] : memref<32x64xf32, #tpu.memory_space<vmem>>, vector<32x64xf32>
    %cst_8 = arith.constant dense<0.000000e+00> : vector<32x64xf32>
    %12 = tpu.matmul %10, %11, %cst_8 {dimension_numbers = #tpu.dot_dimension_numbers<[1], [0], [0], [1], [0, 0, 1, 1], [], []>} : vector<32x32xf32>, vector<32x64xf32>, vector<32x64xf32> -> vector<32x64xf32>
    %13 = vector.extract_strided_slice %0 {offsets = [1, 0], sizes = [1, 64], strides = [1, 1]} : vector<3x128xf32> to vector<1x64xf32>
    %14 = vector.broadcast %13 : vector<1x64xf32> to vector<32x64xf32>
    %15 = arith.addf %12, %14 : vector<32x64xf32>
    %c0_9 = arith.constant 0 : index
    %c0_10 = arith.constant 0 : index
    %16 = vector.load %arg4[%c0_9, %c0_10] : memref<32x64xf32, #tpu.memory_space<vmem>>, vector<32x64xf32>
    %cst_11 = arith.constant dense<0.000000e+00> : vector<32x64xf32>
    %17 = tpu.matmul %10, %16, %cst_11 {dimension_numbers = #tpu.dot_dimension_numbers<[1], [0], [0], [1], [0, 0, 1, 1], [], []>} : vector<32x32xf32>, vector<32x64xf32>, vector<32x64xf32> -> vector<32x64xf32>
    %cst_12 = arith.constant 0.00999999977 : f32
    %18 = vector.broadcast %cst_12 : f32 to vector<32x64xf32>
    %19 = arith.mulf %18, %15 : vector<32x64xf32>
    %20 = arith.maximumf %15, %19 : vector<32x64xf32>
    %21 = arith.addf %20, %17 : vector<32x64xf32>
    %c0_13 = arith.constant 0 : index
    %c0_14 = arith.constant 0 : index
    %22 = vector.load %arg5[%c0_13, %c0_14] : memref<64x128xf32, #tpu.memory_space<vmem>>, vector<64x128xf32>
    %cst_15 = arith.constant dense<0.000000e+00> : vector<32x128xf32>
    %23 = tpu.matmul %21, %22, %cst_15 {dimension_numbers = #tpu.dot_dimension_numbers<[1], [0], [0], [1], [0, 0, 1, 1], [], []>} : vector<32x64xf32>, vector<64x128xf32>, vector<32x128xf32> -> vector<32x128xf32>
    %24 = vector.extract_strided_slice %0 {offsets = [2, 0], sizes = [1, 128], strides = [1, 1]} : vector<3x128xf32> to vector<1x128xf32>
    %25 = vector.broadcast %24 : vector<1x128xf32> to vector<32x128xf32>
    %26 = arith.addf %23, %25 : vector<32x128xf32>
    %c0_16 = arith.constant 0 : index
    %c0_17 = arith.constant 0 : index
    %27 = vector.load %arg7[%c0_16, %c0_17] : memref<32x128xf32, #tpu.memory_space<vmem>>, vector<32x128xf32>
    tpu.vector_store %arg7[%c0_16, %c0_17], %26 {strides = array<i32>} : memref<32x128xf32, #tpu.memory_space<vmem>>, vector<32x128xf32>,
    return
  }
  func.func @transform_0(%arg0: i32) -> (i32, i32) {
    %c0_i32 = arith.constant 0 : i32
    %c0_i32_0 = arith.constant 0 : i32
    return %arg0, %c0_i32 : i32, i32
  }
  func.func @transform_1(%arg0: i32) -> (i32, i32) {
    %c0_i32 = arith.constant 0 : i32
    %c0_i32_0 = arith.constant 0 : i32
    %c0_i32_1 = arith.constant 0 : i32
    return %c0_i32, %c0_i32_0 : i32, i32
  }
  func.func @transform_2(%arg0: i32) -> (i32, i32) {
    %c0_i32 = arith.constant 0 : i32
    %c0_i32_0 = arith.constant 0 : i32
    %c0_i32_1 = arith.constant 0 : i32
    return %c0_i32, %c0_i32_0 : i32, i32
  }
  func.func @transform_3(%arg0: i32) -> (i32, i32) {
    %c0_i32 = arith.constant 0 : i32
    %c0_i32_0 = arith.constant 0 : i32
    %c0_i32_1 = arith.constant 0 : i32
    return %c0_i32, %c0_i32_0 : i32, i32
  }
  func.func @transform_4(%arg0: i32) -> (i32, i32) {
    %c0_i32 = arith.constant 0 : i32
    %c0_i32_0 = arith.constant 0 : i32
    %c0_i32_1 = arith.constant 0 : i32
    return %c0_i32, %c0_i32_0 : i32, i32
  }
  func.func @transform_5(%arg0: i32) -> (i32, i32) {
    %c0_i32 = arith.constant 0 : i32
    %c0_i32_0 = arith.constant 0 : i32
    %c0_i32_1 = arith.constant 0 : i32
    return %c0_i32, %c0_i32_0 : i32, i32
  }
  func.func @transform_6(%arg0: i32) -> (i32, i32) {
    %c0_i32 = arith.constant 0 : i32
    %c0_i32_0 = arith.constant 0 : i32
    return %arg0, %c0_i32 : i32, i32
  }
}

</mosaic_0001>

<bundles_post_ra>
// kernel: tpu_custom_call.1
= control target key start
LH: loop header
LB: loop body
LE: loop exit
PB: predicated region body
PF: predicated region fallthrough
CT: control target
= control target key end

     0   :  { %11 = vsyncpa [#allocation3], 0  ;;  %s1112_s0 = inlined_call_operand.vmem [shape: f32[64,32], index: 0, kind: input, shape index: {}]   ;;  %s1113_s1 = inlined_call_operand.vmem [shape: f32[32,32], index: 1, kind: input, shape index: {}]   ;;  %s1114_s2 = inlined_call_operand.hbm [shape: f32[32,64], index: 2, kind: input, shape index: {}]   ;;  %s1115_s3 = inlined_call_operand.hbm [shape: f32[32,64], index: 3, kind: input, shape index: {}]   ;;  %s1116_s4 = inlined_call_operand.vmem [shape: f32[64,128], index: 4, kind: input, shape index: {}]   ;;  %s1117_s5 = inlined_call_operand.hbm [shape: f32[3,128], index: 5, kind: input, shape index: {}]   ;;  %s1118_s6 = inlined_call_operand.hbm [shape: f32[64,128], index: 6, kind: output, shape index: {}]  }
   0x1   :  { %12 = vsyncpa [#allocation6], 0 }
   0x2   :  { %13 = vsyncpa [#allocation4], 0 }
   0x3   :  { %15 = vsyncpa [#allocation4 + $0x1], 0  ;;  %s933_s21 = smov 0   ;;  %s935_s22 = smov 0  }
   0x4   :  { %s937_s23 = smov 0   ;;  %s939_s24 = smov 0  }
   0x5 LB: > { %s954_s25 = sadd.s32 4294967295, %s889_s24   ;;  %s620_s26 = sadd.s32 4294967294, %s889_s24   ;;  %s889_s24 = sphi %s939_s24, %s1126_s24   ;;  %s885_s23 = sphi %s937_s23, %s1125_s23   ;;  %s881_s22 = sphi %s935_s22, %s1124_s22   ;;  %s877_s21 = sphi %s933_s21, %s1123_s21  }
   0x6   : > { %s958_s27 = sadd.s32 1, %s889_s24   ;;  %s159_s28 = sadd.s32 1, %s885_s23 }
   0x7   : > { %s156_s29 = ssub.s32 %s889_s24, %s958_s27  ;;  %p169_p0 = scmp.ne.s32.totalorder %s885_s23, %s881_s22 }
   0x8   : > { %p157_p1 = scmp.eq.s32.totalorder %s156_s29, 0  ;;  %p170_p2 = scmp.eq.s32.totalorder %s954_s25, 1 }
   0x9   : > { %p175_p3 = scmp.ne.s32.totalorder %s881_s22, %s877_s21  ;;  %p176_p4 = scmp.eq.s32.totalorder %s620_s26, 1 }
   0xa   : > { %s969_s30 = scalar_select %p157_p1, %s885_s23, %s159_s28  }
   0xb   : > { %p971_p5 = por %p170_p2, %p169_p0  ;;  %p975_p6 = por %p176_p4, %p175_p3 }
   0xc   : > { %p621_p7 = scmp.ge.s32.totalorder %s889_s24, 1  ;;  %p183_p8 = scmp.lt.s32.totalorder %s889_s24, 3 }
   0xd   : > { %p683_p9 = scmp.eq.s32.totalorder %s954_s25, 0  ;;  %s211_s12 = sshll.u32 %s1115_s3, 4  ;;  %s212_s12 = int_to_ptr.hbm [resolvable:$true] %s211_s12 }
   0xe   : > { %p982_p10 = pnand %p621_p7, %p183_p8  ;;  %s197_s15 = sshll.u32 %s1114_s2, 4  ;;  %s198_s15 = int_to_ptr.hbm [resolvable:$true] %s197_s15 }
   0xf   : > { %s891_s17 = smov [#allocation5]   ;;  %s892_s19 = smov 128  }
  0x10   : > { %p669_p11 = pneg %p982_p10  ;;  %s213_s18 = sshll.u32 %s891_s17, 4  ;;  %s214_s18 = int_to_ptr.vmem [resolvable:$true] %s213_s18 }
  0x11   : > { %s893_s20 = smov 8   ;;  %s894_s26 = smov [#allocation2]  }
  0x12   : > { %p996_p12 = pnand %p683_p9, %p669_p11  ;;  %s199_s28 = sshll.u32 %s894_s26, 4  ;;  %s200_s28 = int_to_ptr.vmem [resolvable:$true] %s199_s28 }
  0x13   : > { %s229_s11 = sshll.u32 %s1117_s5, 4  ;;  %s895_s13 = smov [#allocation7]   ;;  %s230_s11 = int_to_ptr.hbm [resolvable:$true] %s229_s11 }
  0x14   : > { %675 = dma.hbm_to_vmem [thread:$0]  (!%p996_p12), %s212_s12, 512, %s214_s18, [#allocation6], %s892_s19, %s892_s19, %s893_s20  }
  0x15   : > { %672 = dma.hbm_to_vmem [thread:$0]  (!%p996_p12), %s198_s15, 512, %s200_s28, [#allocation3], %s892_s19, %s892_s19, %s893_s20  }
  0x16   : > { %s231_s14 = sshll.u32 %s895_s13, 4  ;;  %253 = sbr.rel (%p982_p10) target bundleno = 468 (0x1d4), region = 44  ;;  %s232_s14 = int_to_ptr.vmem [resolvable:$true] %s231_s14 }
  0x17   : > { %678 = dma.hbm_to_vmem [thread:$0]  (!%p996_p12), %s230_s11, 64, %s232_s14, [#allocation6]  }
  0x1b   : > { %864 = dma.done.wait (%p683_p9), [#allocation3], 512  }
  0x1c   : > { %866 = vsyncadd (%p683_p9), [#allocation3], 4294966784 }
  0x1d   : > { %868 = dma.done.wait (%p683_p9), [#allocation6], 576  }
  0x1e   : > { %870 = vsyncadd (%p683_p9), [#allocation6], 4294966720  ;;  %s631_s12 = sshll.u32 %s954_s25, 2  ;;  %v309_v0 = vld [vmem:[%s1113_s1 + $0x18] sm:$0xff]  ;;  %v308_v1 = vld [vmem:[%s1113_s1 + $0x10] sm:$0xff]  ;;  %vm311_vm0 = vcmask 261120  }
  0x1f   : > { %p295_p13 = scmp.lt.s32.totalorder %s631_s12, 7  ;;  %336 = vmatpush.msra.mxu0 %v309_v0  ;;  %v307_v2 = vld [vmem:[%s1113_s1 + $0x8] sm:$0xff]  ;;  %v306_v3 = vld [vmem:[%s1113_s1] sm:$0xff]  ;;  %v368_v8 = vld [vmem:[#allocation2 + $0x18] sm:$0xff]  ;;  %vm465_vm1 = vcmask 523264   ;;  %s291_s14 = sand.u32 1, %s881_s22  }
  0x20   : > { %v414_v9 = vld [vmem:[#allocation5 + $0x18] sm:$0xff]  ;;  %394 = vmatpush.msra.mxu1 %v368_v8  ;;  %v367_v10 = vld [vmem:[#allocation2 + $0x10] sm:$0xff]  ;;  %v366_v12 = vld [vmem:[#allocation2 + $0x8] sm:$0xff]  ;;  %s654_s16 = sshll.u32 %s954_s25, 5  ;;  %s512_s26 = scalar_lea.sflag [#allocation4], %s291_s14 }
  0x21   : > { %s1128_s12 = smov (!%p295_p13, %s631_s12), 7  ;;  %337 = vmatpush.msra.mxu0 %v308_v1  ;;  %427 = vmatpush.msra.mxu2 %v414_v9  ;;  %v413_v11 = vld [vmem:[#allocation5 + $0x10] sm:$0xff]  ;;  %v412_v13 = vld [vmem:[#allocation5 + $0x8] sm:$0xff]  ;;  %v365_v14 = vld [vmem:[#allocation2] sm:$0xff]  ;;  %s523_s18 = scalar_lea.hbm %s1118_s6, %s654_s16 }
  0x22   : > { %s632_s15 = sshll.u32 %s1128_s12, 3  ;;  %395 = vmatpush.msra.mxu1 %v367_v10  ;;  %v411_v15 = vld [vmem:[#allocation5] sm:$0xff]  ;;  %v463_v20 = vld [vmem:[%s1116_s4 + $0x38] sm:$0xff]  ;;  %v462_v21 = vld [vmem:[%s1116_s4 + $0x30] sm:$0xff]  ;;  %s630_s12 = sshll.u32 %s291_s14, 5 }
  0x23   : > { %s298_s29 = scalar_lea.vmem %s1112_s0, %s632_s15  ;;  %338 = vmatpush.msra.mxu0 %v307_v2  ;;  %428 = vmatpush.msra.mxu2 %v413_v11  ;;  %v1039_v16 = vld [vmem:[#allocation7] sm:$0x7]  ;;  %v461_v23 = vld [vmem:[%s1116_s4 + $0x28] sm:$0xff]  ;;  %v459_v42 = vld [vmem:[%s1116_s4 + $0x18] sm:$0xff]  ;;  %s293_s15 = scalar_lea.vmem [#allocation8], %s630_s12 }
  0x24   : > { %v302_v4 = vld [vmem:[%s298_s29] sm:$0xff]  ;;  %v303_v5 = vld [vmem:[%s298_s29 + $0x8] sm:$0xff]  ;;  %v304_v6 = vld [vmem:[%s298_s29 + $0x10] sm:$0xff]  ;;  %396 = vmatpush.msra.mxu1 %v366_v12  ;;  %v310_v17 = vperm.slane %v1039_v16, 0  ;;  %486 = vmatpush.msra.mxu3 %v463_v20  ;;  %v369_v46 = vperm.slane %v1039_v16, 1  ;;  %s524_s19 = sshll.u32 %s293_s15, 4  ;;  %s525_s19 = int_to_ptr.vmem [resolvable:$true] %s524_s19 }
  0x25   : > { %339 = vmatpush.msra.mxu0 %v306_v3  ;;  %v305_v7 = vld [vmem:[%s298_s29 + $0x18] sm:$0xff]  ;;  %429 = vmatpush.msra.mxu2 %v412_v13  ;;  %v460_v41 = vld [vmem:[%s1116_s4 + $0x20] sm:$0xff]  ;;  %v458_v43 = vld [vmem:[%s1116_s4 + $0x10] sm:$0xff]  ;;  %s526_s20 = sshll.u32 %s523_s18, 4  ;;  %s839_s11 = scalar_lea.hbm %s1118_s6, 64  ;;  %s527_s20 = int_to_ptr.hbm [resolvable:$true] %s526_s20 }
  0x26   : > { %633 = vmatmul.msk.f32.vlgmr.msra.gmra.mxu0 %vm311_vm0, %v302_v4  ;;  %397 = vmatpush.msra.mxu1 %v365_v14  ;;  %v457_v44 = vld [vmem:[%s1116_s4 + $0x8] sm:$0xff]  ;;  %v456_v45 = vld [vmem:[%s1116_s4] sm:$0xff]  ;;  %s833_s28 = sshra.s32 %s527_s20, 4  ;;  %s834_s28 = int_to_ptr.hbm [resolvable:$true] %s833_s28 }
  0x27   : > { %430 = vmatpush.msra.mxu2 %v411_v15  ;;  %487 = vmatpush.msra.mxu3 %v462_v21  ;;  %s835_s29 = scalar_lea.hbm %s834_s28, 32  ;;  %p840_p3 = scmp.lt.s32.totalorder %s834_s28, %s1118_s6 }
  0x28   : > { %p836_p0 = scmp.ne.s32.totalorder %s834_s28, %s835_s29  ;;  %p841_p4 = scmp.lt.s32.totalorder %s839_s11, %s835_s29 }
  0x29   : > { %488 = vmatpush.msra.mxu3 %v461_v23 }
  0x2a   : > { %p837_p1 = pnand %p836_p0, %p971_p5  ;;  %p842_p7 = por %p841_p4, %p840_p3 }
  0x2b   : > { %489 = vmatpush.msra.mxu3 %v460_v41 }
  0x2c   : > { %p838_p2 = pneg %p837_p1 }
  0x2d   : > { %490 = vmatpush.msra.mxu3 %v459_v42 }
  0x2e   : > { %634 = vmatmul.msk.f32.gmra.mxu0 %vm311_vm0, %v303_v5  ;;  %p843_p8 = pnand %p842_p7, %p838_p2 }
  0x2f   : > { %491 = vmatpush.msra.mxu3 %v458_v43 }
  0x31   : > { %492 = vmatpush.msra.mxu3 %v457_v44 }
  0x33   : > { %493 = vmatpush.msra.mxu3 %v456_v45 }
  0x36   : > { %635 = vmatmul.msk.f32.gmra.mxu0 %vm311_vm0, %v304_v6 }
  0x3e   : > { %636 = vmatmul.msk.f32.gmra.mxu0 %vm311_vm0, %v305_v7 }
  0xa3   : > { %v341_v18 = vpop.f32.mrf.mxu0 }
  0xa4   : > { %v342_v19 = vadd.f32 %v341_v18, %v310_v17 }
  0xa6   : > { %v353_v22 = vmul.f32 0.01, %v342_v19 }
  0xa8   : > { %v357_v24 = vmax.f32 %v342_v19, %v353_v22 }
  0xaa   : > { %v361_v25 = vadd.f32 %v357_v24, %v302_v4 }
  0xab   : > { %v344_v26 = vpop.f32.mrf.mxu0 }
  0xac   : > { %v345_v27 = vadd.f32 %v344_v26, %v310_v17  ;;  %637 = vmatmul.msk.f32.vlgmr.msra.gmra.mxu1 %vm311_vm0, %v361_v25  ;;  %641 = vmatmul.msk.f32.vlgmr.msra.gmra.mxu2 %vm311_vm0, %v361_v25 }
  0xae   : > { %v354_v28 = vmul.f32 0.01, %v345_v27 }
  0xb0   : > { %v358_v29 = vmax.f32 %v345_v27, %v354_v28 }
  0xb2   : > { %v362_v30 = vadd.f32 %v358_v29, %v303_v5 }
  0xb3   : > { %v347_v31 = vpop.f32.mrf.mxu0 }
  0xb4   : > { %v348_v32 = vadd.f32 %v347_v31, %v310_v17  ;;  %638 = vmatmul.msk.f32.gmra.mxu1 %vm311_vm0, %v362_v30  ;;  %642 = vmatmul.msk.f32.gmra.mxu2 %vm311_vm0, %v362_v30 }
  0xb6   : > { %v355_v33 = vmul.f32 0.01, %v348_v32 }
  0xb8   : > { %v359_v34 = vmax.f32 %v348_v32, %v355_v33 }
  0xba   : > { %v363_v35 = vadd.f32 %v359_v34, %v304_v6 }
  0xbb   : > { %v350_v36 = vpop.f32.mrf.mxu0 }
  0xbc   : > { %v351_v37 = vadd.f32 %v350_v36, %v310_v17  ;;  %639 = vmatmul.msk.f32.gmra.mxu1 %vm311_vm0, %v363_v35  ;;  %643 = vmatmul.msk.f32.gmra.mxu2 %vm311_vm0, %v363_v35 }
  0xbe   : > { %v356_v38 = vmul.f32 0.01, %v351_v37 }
  0xc0   : > { %v360_v39 = vmax.f32 %v351_v37, %v356_v38 }
  0xc2   : > { %v364_v40 = vadd.f32 %v360_v39, %v305_v7  ;;  %v464_v7 = vperm.slane %v1039_v16, 2 }
  0xc4   : > { %640 = vmatmul.msk.f32.gmra.mxu1 %vm311_vm0, %v364_v40  ;;  %644 = vmatmul.msk.f32.gmra.mxu2 %vm311_vm0, %v364_v40 }
 0x129   : > { %v399_v47 = vpop.f32.mrf.mxu1 }
 0x12a   : > { %v400_v48 = vadd.f32 %v399_v47, %v369_v46 }
 0x12c   : > { %v444_v49 = vmul.f32 0.01, %v400_v48 }
 0x12e   : > { %v448_v50 = vmax.f32 %v400_v48, %v444_v49 }
 0x12f   : > { %v432_v51 = vpop.f32.mrf.mxu2 }
 0x130   : > { %v452_v52 = vadd.f32 %v448_v50, %v432_v51 }
 0x131   : > { %v402_v53 = vpop.f32.mrf.mxu1 }
 0x132   : > { %v403_v54 = vadd.f32 %v402_v53, %v369_v46  ;;  %645 = vmatmul.msk.f32.vlgmr.msra.gmra.mxu3 %vm465_vm1, %v452_v52 }
 0x134   : > { %v445_v55 = vmul.f32 0.01, %v403_v54 }
 0x136   : > { %v449_v56 = vmax.f32 %v403_v54, %v445_v55 }
 0x137   : > { %v435_v57 = vpop.f32.mrf.mxu2 }
 0x138   : > { %v453_v58 = vadd.f32 %v449_v56, %v435_v57 }
 0x139   : > { %v405_v59 = vpop.f32.mrf.mxu1 }
 0x13a   : > { %v406_v60 = vadd.f32 %v405_v59, %v369_v46  ;;  %646 = vmatmul.msk.f32.gmra.mxu3 %vm465_vm1, %v453_v58 }
 0x13c   : > { %v446_v61 = vmul.f32 0.01, %v406_v60 }
 0x13e   : > { %v450_v62 = vmax.f32 %v406_v60, %v446_v61 }
 0x13f   : > { %v438_v63 = vpop.f32.mrf.mxu2 }
 0x140   : > { %v454_v0 = vadd.f32 %v450_v62, %v438_v63 }
 0x141   : > { %v408_v1 = vpop.f32.mrf.mxu1 }
 0x142   : > { %v409_v2 = vadd.f32 %v408_v1, %v369_v46  ;;  %647 = vmatmul.msk.f32.gmra.mxu3 %vm465_vm1, %v454_v0 }
 0x144   : > { %v447_v3 = vmul.f32 0.01, %v409_v2 }
 0x146   : > { %v451_v4 = vmax.f32 %v409_v2, %v447_v3 }
 0x147   : > { %v441_v5 = vpop.f32.mrf.mxu2 }
 0x148   : > { %v455_v6 = vadd.f32 %v451_v4, %v441_v5 }
 0x14a   : > { %648 = vmatmul.msk.f32.gmra.mxu3 %vm465_vm1, %v455_v6 }
 0x1b5   : > { %v495_v8 = vpop.f32.mrf.mxu3 }
 0x1b6   : > { %v496_v9 = vadd.f32 %v495_v8, %v464_v7 }
 0x1b8   : > { %507 = vst [vmem:[%s293_s15] sm:$0xff] %v496_v9 }
 0x1bd   : > { %v498_v10 = vpop.f32.mrf.mxu3 }
 0x1be   : > { %v499_v11 = vadd.f32 %v498_v10, %v464_v7 }
 0x1c0   : > { %508 = vst [vmem:[%s293_s15 + $0x8] sm:$0xff] %v499_v11 }
 0x1c5   : > { %v501_v12 = vpop.f32.mrf.mxu3 }
 0x1c6   : > { %v502_v13 = vadd.f32 %v501_v12, %v464_v7 }
 0x1c8   : > { %509 = vst [vmem:[%s293_s15 + $0x10] sm:$0xff] %v502_v13 }
 0x1cd   : > { %v504_v14 = vpop.f32.mrf.mxu3 }
 0x1ce   : > { %v505_v15 = vadd.f32 %v504_v14, %v464_v7 }
 0x1d0   : > { %510 = vst [vmem:[%s293_s15 + $0x18] sm:$0xff] %v505_v15 }
 0x1d1   : > { %846 = shalt.err (!%p843_p8)
}
 0x1d2   : > { %s896_s14 = smov 128   ;;  %s897_s15 = smov 8  }
 0x1d3   : > { %667 = dma.vmem_to_hbm [thread:$0]  (%p971_p5), %s525_s19, 512, %s527_s20, %s512_s26, %s896_s14, %s896_s14, %s897_s15  }
 0x1d4 PF: > { %p689_p9 = scmp.ge.s32.totalorder %s889_s24, 2  ;;  %s541_s16 = sand.u32 1, %s877_s21  }
 0x1d5   : > { %s542_s9 = scalar_lea.sflag [#allocation4], %s541_s16 }
 0x1d6   : > { %p680_p10 = pnand %p689_p9, %p975_p6 }
 0x1d8   : > { %p681_p11 = pneg %p680_p10 }
 0x1da   : > { %872 = dma.done.wait (%p681_p11), %s542_s9, 512  }
 0x1db   : > { %874 = vsyncadd (%p681_p11), %s542_s9, 4294966784  ;;  %p18_p12 = scmp.ge.s32.totalorder %s958_s27, 4   ;;  %s1123_s21 = smov %s881_s22 }
 0x1dc   : > { %s1124_s22 = smov %s885_s23  ;;  %s1125_s23 = smov %s969_s30 }
 0x1dd   : > { %s1126_s24 = smov %s958_s27  ;;  %20 = sbr.rel (!%p18_p12) target bundleno = 5 (0x5), region = 92 }
 0x1e2   :  { %548 = vsyncpa [#allocation3], 1 }
 0x1e3   :  { %550 = vsyncpa [#allocation3 + $0x1], 1 }
 0x1e4   :  { %551 = vsyncpa [#allocation6], 1 }
 0x1e5   :  { %552 = vsyncpa [#allocation4], 1 }
 0x1e6   :  { %554 = vsyncpa [#allocation4 + $0x1], 1 }

</bundles_post_ra>
